<compile_context>
chip_gen: v7x
topology: tpu7x:2x2x1
jax: 0.10.0
libtpu: 0.0.40
codegen_flags: <defaults>
</compile_context>

<pallas_src>
import jax
import jax.numpy as jnp
from jax import lax
from jax.experimental import pallas as pl
from jax.experimental.pallas import tpu as pltpu


def _multinomial_onehot_kernel(probs_ref, u_ref, out_ref):
    """One Gumbel-max multinomial draw per row, emitted as a one-hot row.

    probs_ref: VMEM (TILE_N, M)  -- nonnegative row weights (need not sum to 1)
    u_ref    : VMEM (TILE_N, M)  -- uniform(0,1) noise, one value per element
    out_ref  : VMEM (TILE_N, M)  -- float32 one-hot output
    """
    probs = probs_ref[...].astype(jnp.float32)          # (TN, M)
    u = u_ref[...].astype(jnp.float32)                  # (TN, M)
    tn, m = probs.shape

    tiny = jnp.float32(1e-30)
    neg_big = jnp.float32(-1e30)

    # log-weights; zero-weight categories get a huge negative score so they
    # can never win the argmax (torch.multinomial never returns them).
    logw = jnp.where(probs > 0.0, jnp.log(jnp.maximum(probs, tiny)), neg_big)

    # Gumbel noise from uniform (EUP log ops, separate issue slot -> cheap).
    g = -jnp.log(-jnp.log(jnp.maximum(u, tiny)))

    scores = logw + g                                    # (TN, M)
    rowmax = jnp.max(scores, axis=-1, keepdims=True)     # (TN, 1) lane reduce

    # First index attaining the row max -> exactly one 1 per row even on ties.
    col = lax.broadcasted_iota(jnp.int32, (tn, m), 1)    # (TN, M)
    idx = jnp.min(jnp.where(scores >= rowmax, col, m),
                  axis=-1, keepdims=True)                # (TN, 1)

    out_ref[...] = (col == idx).astype(out_ref.dtype)


def _pick_tile_n(n: int, m: int) -> int:
    """Rows per block: big enough to amortize per-step overhead, small enough
    that 3 double-buffered f32 blocks fit comfortably in scoped VMEM (v7x has
    only 64 MiB physical / 32 MiB default scoped)."""
    rows_for_2mib = max(8, (2 << 20) // (4 * m))   # ~2 MiB per f32 block
    tile = min(512, rows_for_2mib)
    if n <= tile:
        return n                                   # single block == full dim
    return max(8, (tile // 8) * 8)                 # sublane-aligned tile


def multinomial_one_hot(probs, key):
    """Sample one category per row of `probs`; return float32 one-hot (N, M)."""
    n, m = probs.shape
    u = jax.random.uniform(key, (n, m), dtype=jnp.float32)

    tile_n = _pick_tile_n(n, m)
    grid = (pl.cdiv(n, tile_n),)
    row_spec = pl.BlockSpec((tile_n, m), lambda i: (i, 0))

    return pl.pallas_call(
        _multinomial_onehot_kernel,
        out_shape=jax.ShapeDtypeStruct((n, m), jnp.float32),
        grid=grid,
        in_specs=[row_spec, row_spec],
        out_specs=row_spec,
        compiler_params=pltpu.CompilerParams(
            dimension_semantics=("parallel",),
        ),
    )(probs, u)


if __name__ == "__main__":
    key = jax.random.PRNGKey(0)
    k_logits, k_sample = jax.random.split(key)

    N, M = 8, 128
    logits = jax.random.normal(k_logits, (N, M), dtype=jnp.float32)
    probs = jax.nn.softmax(logits, axis=-1)              # (N, M) row probs

    out = multinomial_one_hot(probs, k_sample)
    out = jax.block_until_ready(out)

    # Sanity checks: float32 output, each row exactly one-hot.
    assert out.shape == (N, M)
    assert out.dtype == jnp.float32
    assert bool(jnp.all((out == 0.0) | (out == 1.0))), "output must be binary"
    assert bool(jnp.all(jnp.sum(out, axis=-1) == 1.0)), \
        "each row must contain exactly one 1"
    # Sampled categories must have nonzero probability.
    assert bool(jnp.all(jnp.sum(out * probs, axis=-1) > 0.0))

    print("KERNEL_OK")
</pallas_src>

<mosaic_0001>
module attributes {stable_mosaic.version = 11 : i64} {
  func.func @_multinomial_onehot_kernel(%arg0: i32, %arg1: memref<8x128xf32, #tpu.memory_space<vmem>>, %arg2: memref<8x128xf32, #tpu.memory_space<vmem>>, %arg3: memref<8x128xf32, #tpu.memory_space<vmem>>) attributes {dimension_semantics = [#tpu.dimension_semantics<parallel>], iteration_bounds = array<i64: 1>, scalar_prefetch = 0 : i64, scratch_operands = 0 : i64, tpu.core_type = #tpu.core_type<tc>, window_params = [{transform_indices = @transform_0, window_bounds = array<i64: 8, 128>}, {transform_indices = @transform_1, window_bounds = array<i64: 8, 128>}, {transform_indices = @transform_2, window_bounds = array<i64: 8, 128>}]} {
    %c0 = arith.constant 0 : index
    %c0_0 = arith.constant 0 : index
    %0 = vector.load %arg1[%c0, %c0_0] : memref<8x128xf32, #tpu.memory_space<vmem>>, vector<8x128xf32>
    %c0_1 = arith.constant 0 : index
    %c0_2 = arith.constant 0 : index
    %1 = vector.load %arg2[%c0_1, %c0_2] : memref<8x128xf32, #tpu.memory_space<vmem>>, vector<8x128xf32>
    %cst = arith.constant 0.000000e+00 : f32
    %2 = vector.broadcast %cst : f32 to vector<8x128xf32>
    %3 = arith.cmpf ogt, %0, %2 : vector<8x128xf32>
    %cst_3 = arith.constant 1.000000e-30 : f32
    %4 = vector.broadcast %cst_3 : f32 to vector<8x128xf32>
    %5 = arith.maximumf %0, %4 : vector<8x128xf32>
    %6 = math.log %5 : vector<8x128xf32>
    %cst_4 = arith.constant -1.000000e+30 : f32
    %7 = vector.broadcast %cst_4 : f32 to vector<8x128xf32>
    %8 = arith.select %3, %6, %7 : vector<8x128xi1>, vector<8x128xf32>
    %cst_5 = arith.constant 1.000000e-30 : f32
    %9 = vector.broadcast %cst_5 : f32 to vector<8x128xf32>
    %10 = arith.maximumf %1, %9 : vector<8x128xf32>
    %11 = math.log %10 : vector<8x128xf32>
    %cst_6 = arith.constant 0.000000e+00 : f32
    %12 = vector.broadcast %cst_6 : f32 to vector<8x128xf32>
    %13 = arith.subf %12, %11 : vector<8x128xf32>
    %14 = math.log %13 : vector<8x128xf32>
    %cst_7 = arith.constant 0.000000e+00 : f32
    %15 = vector.broadcast %cst_7 : f32 to vector<8x128xf32>
    %16 = arith.subf %15, %14 : vector<8x128xf32>
    %17 = arith.addf %8, %16 : vector<8x128xf32>
    %cst_8 = arith.constant dense<0xFF800000> : vector<8xf32>
    %18 = vector.multi_reduction <maximumf>, %17, %cst_8 [1] : vector<8x128xf32> to vector<8xf32>
    %19 = vector.shape_cast %18 : vector<8xf32> to vector<8x1xf32>
    %20 = tpu.iota {dimensions = array<i32: 1>} : vector<8x128xi32>
    %21 = vector.broadcast %19 : vector<8x1xf32> to vector<8x128xf32>
    %22 = arith.cmpf oge, %17, %21 : vector<8x128xf32>
    %c128_i32 = arith.constant 128 : i32
    %23 = vector.broadcast %c128_i32 : i32 to vector<8x128xi32>
    %24 = arith.select %22, %20, %23 : vector<8x128xi1>, vector<8x128xi32>
    %cst_9 = arith.constant dense<2147483647> : vector<8xi32>
    %25 = vector.multi_reduction <minsi>, %24, %cst_9 [1] : vector<8x128xi32> to vector<8xi32>
    %26 = vector.shape_cast %25 : vector<8xi32> to vector<8x1xi32>
    %27 = vector.broadcast %26 : vector<8x1xi32> to vector<8x128xi32>
    %28 = arith.cmpi eq, %20, %27 : vector<8x128xi32>
    %29 = arith.extui %28 : vector<8x128xi1> to vector<8x128xi32>
    %30 = arith.sitofp %29 : vector<8x128xi32> to vector<8x128xf32>
    %c0_10 = arith.constant 0 : index
    %c0_11 = arith.constant 0 : index
    %31 = vector.load %arg3[%c0_10, %c0_11] : memref<8x128xf32, #tpu.memory_space<vmem>>, vector<8x128xf32>
    tpu.vector_store %arg3[%c0_10, %c0_11], %30 {strides = array<i32>} : memref<8x128xf32, #tpu.memory_space<vmem>>, vector<8x128xf32>,
    return
  }
  func.func @transform_0(%arg0: i32) -> (i32, i32) {
    %c0_i32 = arith.constant 0 : i32
    %c0_i32_0 = arith.constant 0 : i32
    return %arg0, %c0_i32 : i32, i32
  }
  func.func @transform_1(%arg0: i32) -> (i32, i32) {
    %c0_i32 = arith.constant 0 : i32
    %c0_i32_0 = arith.constant 0 : i32
    return %arg0, %c0_i32 : i32, i32
  }
  func.func @transform_2(%arg0: i32) -> (i32, i32) {
    %c0_i32 = arith.constant 0 : i32
    %c0_i32_0 = arith.constant 0 : i32
    return %arg0, %c0_i32 : i32, i32
  }
}

</mosaic_0001>

<bundles_post_ra>
// kernel: tpu_custom_call.1
= control target key start
LH: loop header
LB: loop body
LE: loop exit
PB: predicated region body
PF: predicated region fallthrough
CT: control target
= control target key end

     0   :  { %7 = vsyncpa [#allocation3], 0  ;;  %s229_s0 = inlined_call_operand.hbm [shape: f32[8,128], index: 0, kind: input, shape index: {}]   ;;  %s230_s1 = inlined_call_operand.hbm [shape: f32[8,128], index: 1, kind: input, shape index: {}]   ;;  %s231_s2 = inlined_call_operand.hbm [shape: f32[8,128], index: 2, kind: output, shape index: {}]  }
   0x1   :  { %8 = vsyncpa [#allocation6], 0 }
   0x2   :  { %9 = vsyncpa [#allocation4], 0  ;;  %s174_s9 = smov [#allocation2]   ;;  %s175_s11 = smov [#allocation5]  }
   0x3   :  { %s16_s10 = sshll.u32 %s174_s9, 4  ;;  %s26_s12 = sshll.u32 %s175_s11, 4  ;;  %s17_s10 = int_to_ptr.vmem [resolvable:$true] %s16_s10  ;;  %s27_s12 = int_to_ptr.vmem [resolvable:$true] %s26_s12 }
   0x4   :  { %s102_s15 = scalar_lea.hbm %s229_s0, 128 }
   0x5   :  { %p103_p0 = scmp.ne.s32.totalorder %s229_s0, %s102_s15  ;;  %p106_p1 = scmp.lt.u32.totalorder %s102_s15, %s229_s0 }
   0x7   :  { %p108_p2 = pnand %p106_p1, %p103_p0 }
   0x9   :  { %111 = shalt.err (!%p108_p2)
}
   0xa   :  { %s112_s20 = scalar_lea.vmem %s17_s10, 128  ;;  %p117_p4 = scmp.lt.s32.totalorder %s17_s10, %s17_s10 }
   0xb   :  { %p113_p3 = scmp.ne.s32.totalorder %s17_s10, %s112_s20  ;;  %p118_p5 = scmp.lt.s32.totalorder %s112_s20, %s112_s20 }
   0xd   :  { %p119_p6 = por %p118_p5, %p117_p4 }
   0xf   :  { %p120_p7 = pnand %p119_p6, %p113_p3 }
  0x11   :  { %123 = shalt.err (!%p120_p7)
}
  0x12   :  { %19 = dma.hbm_to_vmem [thread:$0]  %s229_s0, 128, %s17_s10, [#allocation3]  }
  0x13   :  { %s124_s25 = scalar_lea.hbm %s230_s1, 128 }
  0x14   :  { %p125_p8 = scmp.ne.s32.totalorder %s230_s1, %s124_s25  ;;  %p128_p9 = scmp.lt.u32.totalorder %s124_s25, %s230_s1 }
  0x16   :  { %p130_p10 = pnand %p128_p9, %p125_p8 }
  0x18   :  { %133 = shalt.err (!%p130_p10)
}
  0x19   :  { %s134_s30 = scalar_lea.vmem %s27_s12, 128  ;;  %p139_p12 = scmp.lt.s32.totalorder %s27_s12, %s27_s12 }
  0x1a   :  { %p135_p11 = scmp.ne.s32.totalorder %s27_s12, %s134_s30  ;;  %p140_p13 = scmp.lt.s32.totalorder %s134_s30, %s134_s30 }
  0x1c   :  { %p141_p0 = por %p140_p13, %p139_p12 }
  0x1e   :  { %p142_p1 = pnand %p141_p0, %p135_p11 }
  0x20   :  { %145 = shalt.err (!%p142_p1)
}
  0x21   :  { %29 = dma.hbm_to_vmem [thread:$0]  %s230_s1, 128, %s27_s12, [#allocation6]  }
  0x22   :  { %168 = dma.done.wait [#allocation3], 128  }
  0x23   :  { %169 = vsyncadd [#allocation3], 4294967168 }
  0x24   :  { %170 = dma.done.wait [#allocation6], 128  }
  0x25   :  { %171 = vsyncadd [#allocation6], 4294967168  ;;  %v37_v0 = vld [vmem:[#allocation5] sm:$0xff]  ;;  %v36_v2 = vld [vmem:[#allocation2] sm:$0xff]  ;;  %v53_v14 = vlaneseq  ;;  %s176_s1 = smov [#allocation7]   ;;  %v177_v29 = vmov 0.0  }
  0x26   :  { %v43_v1 = vmax.f32 %v37_v0, 1e-30  ;;  %v39_v3 = vmax.f32 %v36_v2, 1e-30  ;;  %vm38_vm0 = vcmp.gt.f32.partialorder %v36_v2, 0.0  ;;  %s81_s4 = sshll.u32 %s176_s1, 4  ;;  %s82_s4 = int_to_ptr.vmem [resolvable:$true] %s81_s4 }
  0x27   :  { %v54_v15 = vand.u32 127, %v53_v14  ;;  %s146_s5 = scalar_lea.vmem %s82_s4, 128  ;;  %p151_p3 = scmp.lt.s32.totalorder %s82_s4, %s82_s4 }
  0x28   :  { %96 = vlog2.f32 %v43_v1  ;;  %p147_p2 = scmp.ne.s32.totalorder %s82_s4, %s146_s5  ;;  %p152_p4 = scmp.lt.s32.totalorder %s146_s5, %s146_s5 }
  0x29   :  { %98 = vlog2.f32 %v39_v3 }
  0x2a   :  { %p153_p5 = por %p152_p4, %p151_p3 }
  0x2c   :  { %p154_p6 = pnand %p153_p5, %p147_p2 }
  0x32   :  { %v97_v4 = vpop.eup %96 }
  0x33   :  { %v45_v5 = vmul.f32 0.6931472, %v97_v4  ;;  %v99_v7 = vpop.eup %98 }
  0x34   :  { %v41_v8 = vmul.f32 0.6931472, %v99_v7 }
  0x35   :  { %v46_v6 = vsub.f32 0.0, %v45_v5 }
  0x36   :  { %v42_v11 = vsel %vm38_vm0, %v41_v8, -1e+30 }
  0x37   :  { %100 = vlog2.f32 %v46_v6 }
  0x41   :  { %v101_v9 = vpop.eup %100 }
  0x42   :  { %v48_v10 = vmul.f32 0.6931472, %v101_v9 }
  0x44   :  { %v49_v12 = vsub.f32 0.0, %v48_v10 }
  0x46   :  { %v50_v13 = vadd.f32 %v49_v12, %v42_v11 }
  0x48   :  { %51 = vmax.xlane.f32.xlu0 %v50_v13 }
  0xd5   :  { %v52_v16 = vpop.xlane.xlu0 %51 }
  0xd6   :  { %vm55_vm1 = vcmp.ge.f32.partialorder %v50_v13, %v52_v16 }
  0xd7   :  { %v56_v17 = vsel %vm55_vm1, %v54_v15, 128 }
  0xd8   :  { %v58_v18 = vshra.s32 %v56_v17, 16  ;;  %v57_v20 = vand.u32 65535, %v56_v17 }
  0xda   :  { %v60_v19 = vcvt.s32.f32 %v58_v18  ;;  %v59_v22 = vcvt.s32.f32 %v57_v20 }
  0xdc   :  { %61 = vmin.xlane.f32.xlu0 %v60_v19 }
 0x169   :  { %v62_v21 = vpop.xlane.xlu0 %61 }
 0x16a   :  { %vm63_vm2 = vcmp.eq.f32.partialorder %v60_v19, %v62_v21  ;;  %v68_v24 = vcvt.f32.s32 %v62_v21 }
 0x16b   :  { %v64_v23 = vsel %vm63_vm2, %v59_v22, inf }
 0x16c   :  { %65 = vmin.xlane.f32.xlu1 %v64_v23  ;;  %v69_v26 = vshll.u32 %v68_v24, 16 }
 0x1f9   :  { %v66_v25 = vpop.xlane.xlu1 %65 }
 0x1fa   :  { %v67_v27 = vcvt.f32.s32 %v66_v25 }
 0x1fc   :  { %v70_v28 = vadd.s32 %v69_v26, %v67_v27 }
 0x1fe   :  { %vm71_vm3 = vcmp.eq.s32.totalorder %v54_v15, %v70_v28 }
 0x1ff   :  { %v91_v30 = vsel %vm71_vm3, 1.0, %v177_v29 }
 0x200   :  { %74 = vst [vmem:[#allocation7] sm:$0xff] %v91_v30 }
 0x201   :  { %157 = shalt.err (!%p154_p6)
}
 0x202   :  { %s158_s8 = scalar_lea.hbm %s231_s2, 128 }
 0x203   :  { %p159_p7 = scmp.ne.s32.totalorder %s231_s2, %s158_s8  ;;  %p162_p8 = scmp.lt.u32.totalorder %s158_s8, %s231_s2 }
 0x205   :  { %p164_p9 = pnand %p162_p8, %p159_p7 }
 0x207   :  { %167 = shalt.err (!%p164_p9)
}
 0x208   :  { %84 = dma.vmem_to_hbm [thread:$0]  %s82_s4, 128, %s231_s2, [#allocation4]  }
 0x209   :  { %172 = dma.done.wait [#allocation4], 128  }
 0x20a   :  { %173 = vsyncadd [#allocation4], 4294967168 }
 0x20b   :  { %88 = vsyncpa [#allocation3], 1 }
 0x20c   :  { %89 = vsyncpa [#allocation6], 1 }
 0x20d   :  { %90 = vsyncpa [#allocation4], 1 }

</bundles_post_ra>
